<compile_context>
chip_gen: v7x
topology: tpu7x:2x2x1
jax: 0.10.0
libtpu: 0.0.40
codegen_flags: <defaults>
</compile_context>

<pallas_src>
import functools

import jax
import jax.numpy as jnp
import numpy as np
from jax.experimental import pallas as pl
from jax.experimental.pallas import tpu as pltpu


def _semiconv_kernel(x_ref, mask_ref, w_ref, bias_ref, o_ref, *,
                     C_out, C_in, H, W, K, num_groups, tap_groups):
    """x_ref:    VMEM (C_in, H*W)          one batch element, flattened spatial
       mask_ref: VMEM (K*K, H*W)           0 where tap is in-bounds, -inf where OOB
       w_ref:    VMEM (C_out, C_in, G)     per-group additive weights
       bias_ref: VMEM (C_out, 1)
       o_ref:    VMEM (C_out, H*W)         lane-dense output block
    """
    HW = H * W
    p = K // 2

    x = x_ref[...]                       # (C_in, HW) f32

    # --- per-group max of shifted (boundary-masked) planes, shared by all C_out ---
    gm = [None] * num_groups
    for km in range(K):
        for kn in range(K):
            t = km * K + kn
            dm = km - p
            dn = kn - p
            off = dm * W + dn
            shift = (-off) % HW
            # rolled[:, h*W + w] == x[:, ((h+dm)*W + (w+dn)) mod HW]; wrapped /
            # out-of-bounds lanes get -inf added via the precomputed mask plane.
            rolled = pltpu.roll(x, shift=shift, axis=1) if shift else x
            shifted = rolled + mask_ref[t:t + 1, :]              # (C_in, HW)
            g = tap_groups[t]
            gm[g] = shifted if gm[g] is None else jnp.maximum(gm[g], shifted)

    # --- max-plus over groups (each group shares one kernel value per (co,ci)) ---
    wk = w_ref[...]                      # (C_out, C_in, G)
    m = None
    for g in range(num_groups):
        val = gm[g][None, :, :] + wk[:, :, g:g + 1]              # (C_out, C_in, HW)
        m = val if m is None else jnp.maximum(m, val)

    # Sum over input channels, add bias once; full lane-dense store.
    o_ref[...] = jnp.sum(m, axis=1) + bias_ref[...]


def compute_gaussian_like_kernels(scales, K):
    """Matches SemiConvModel._compute_kernel exactly (note Python's (-K)//2)."""
    C_out, C_in = scales.shape
    z_i = jnp.linspace((-K) // 2 + 1, K // 2, K, dtype=jnp.float32)
    z = z_i[:, None] ** 2 + z_i[None, :] ** 2                    # (K, K)
    h = -z[None, :, :] / (4.0 * scales.reshape(-1, 1, 1))        # (Co*Ci, K, K)
    return h.reshape(C_out, C_in, K, K)


def _tap_masks_and_groups(H, W, K):
    """Host-side statics: additive -inf boundary masks and tap->group mapping."""
    p = K // 2
    r = np.arange(H * W, dtype=np.int64) // W
    c = np.arange(H * W, dtype=np.int64) % W
    mask = np.zeros((K * K, H * W), dtype=np.float32)
    for km in range(K):
        for kn in range(K):
            dm, dn = km - p, kn - p
            valid = (r + dm >= 0) & (r + dm < H) & (c + dn >= 0) & (c + dn < W)
            mask[km * K + kn] = np.where(valid, 0.0, -np.inf).astype(np.float32)

    z = np.linspace((-K) // 2 + 1, K // 2, K).astype(np.float32)
    d2 = (z[:, None] ** 2 + z[None, :] ** 2).reshape(-1)         # (K*K,)
    uniq, tap_group = np.unique(d2, return_inverse=True)         # groups by distance
    return mask, uniq.astype(np.float32), tuple(int(g) for g in tap_group)


def semi_conv_pallas(x, scales, bias, K):
    """x: (B, C_in, H, W) f32, scales: (C_out, C_in), bias: (C_out,)."""
    B, C_in, H, W = x.shape
    C_out = scales.shape[0]
    HW = H * W

    mask_np, uniq_d2, tap_groups = _tap_masks_and_groups(H, W, K)
    G = uniq_d2.shape[0]

    # Per-group weights: identical values to the full kernel tensor at any tap
    # of that group (same formula, same inputs), so results match bit-for-bit.
    scales_f = scales.astype(jnp.float32)
    w_groups = (-jnp.asarray(uniq_d2)[None, None, :]
                / (4.0 * scales_f[:, :, None]))                  # (C_out, C_in, G)

    bias2d = bias.astype(jnp.float32).reshape(C_out, 1)
    masks = jnp.asarray(mask_np)                                 # (K*K, HW)
    # Free row-major reshape: lane-dense last axis (H*W = 256, multiple of 128).
    x_flat = x.astype(jnp.float32).reshape(B, C_in, HW)

    kern = functools.partial(
        _semiconv_kernel, C_out=C_out, C_in=C_in, H=H, W=W, K=K,
        num_groups=G, tap_groups=tap_groups)

    out_flat = pl.pallas_call(
        kern,
        out_shape=jax.ShapeDtypeStruct((B, C_out, HW), jnp.float32),
        grid=(B,),
        in_specs=[
            pl.BlockSpec((None, C_in, HW), lambda b: (b, 0, 0)),
            pl.BlockSpec((K * K, HW), lambda b: (0, 0)),
            pl.BlockSpec((C_out, C_in, G), lambda b: (0, 0, 0)),
            pl.BlockSpec((C_out, 1), lambda b: (0, 0)),
        ],
        out_specs=pl.BlockSpec((None, C_out, HW), lambda b: (b, 0, 0)),
        compiler_params=pltpu.CompilerParams(
            # Batch axis is parallel: on v7x the two TensorCores split disjoint
            # batches; on v5e/v6e this is a no-op.
            dimension_semantics=("parallel",),
        ),
    )(x_flat, masks, w_groups, bias2d)

    return out_flat.reshape(B, C_out, H, W)


def semi_conv_reference(x, scales, bias, K):
    """Pure-JAX reference mirroring the PyTorch semi_conv (unfold + add + max + sum)."""
    B, C_in, H, W = x.shape
    C_out = scales.shape[0]
    p = K // 2
    kernels = compute_gaussian_like_kernels(scales, K)
    x_pad = jnp.pad(x, ((0, 0), (0, 0), (p, p), (p, p)), constant_values=-jnp.inf)
    patches = jnp.stack(
        [x_pad[:, :, m:m + H, n:n + W] for m in range(K) for n in range(K)], axis=2
    )  # (B, C_in, K*K, H, W)
    kf = kernels.reshape(C_out, C_in, K * K)
    mult = patches[:, None] + kf[None, :, :, :, None, None]  # (B, Co, Ci, K*K, H, W)
    agg = jnp.max(mult, axis=3)                              # max over kernel taps
    summed = jnp.sum(agg, axis=2)                            # sum over C_in
    return summed + bias[None, :, None, None]


if __name__ == "__main__":
    B, C_in, C_out, H, W, K = 2, 4, 4, 16, 16, 3

    key = jax.random.PRNGKey(0)
    kx, ks = jax.random.split(key)
    x = jax.random.normal(kx, (B, C_in, H, W), dtype=jnp.float32)
    # Deterministic stand-in for torch.rand init; bounded away from 0 to keep
    # the 1/scales division well-conditioned.
    scales = jax.random.uniform(ks, (C_out, C_in), dtype=jnp.float32,
                                minval=0.25, maxval=1.0)
    bias = jnp.zeros((C_out,), dtype=jnp.float32)

    out = semi_conv_pallas(x, scales, bias, K)
    out = jax.block_until_ready(out)

    ref = semi_conv_reference(x, scales, bias, K)
    np.testing.assert_allclose(np.asarray(out), np.asarray(ref), rtol=1e-5, atol=1e-5)

    print("KERNEL_OK")
</pallas_src>

<mosaic_0001>
module attributes {stable_mosaic.version = 11 : i64} {
  func.func @_semiconv_kernel(%arg0: i32, %arg1: memref<1x4x256xf32, #tpu.memory_space<vmem>>, %arg2: memref<9x256xf32, #tpu.memory_space<vmem>>, %arg3: memref<4x4x3xf32, #tpu.memory_space<vmem>>, %arg4: memref<4x1xf32, #tpu.memory_space<vmem>>, %arg5: memref<1x4x256xf32, #tpu.memory_space<vmem>>) attributes {dimension_semantics = [#tpu.dimension_semantics<parallel>], iteration_bounds = array<i64: 2>, scalar_prefetch = 0 : i64, scratch_operands = 0 : i64, tpu.core_type = #tpu.core_type<tc>, window_params = [{transform_indices = @transform_0, window_bounds = array<i64: 1, 4, 256>}, {pipeline_mode = #tpu.pipeline_mode<synchronous>, transform_indices = @transform_1, window_bounds = array<i64: 9, 256>}, {pipeline_mode = #tpu.pipeline_mode<synchronous>, transform_indices = @transform_2, window_bounds = array<i64: 4, 4, 3>}, {pipeline_mode = #tpu.pipeline_mode<synchronous>, transform_indices = @transform_3, window_bounds = array<i64: 4, 1>}, {transform_indices = @transform_4, window_bounds = array<i64: 1, 4, 256>}]} {
    %c0 = arith.constant 0 : index
    %c0_0 = arith.constant 0 : index
    %c0_1 = arith.constant 0 : index
    %0 = vector.load %arg1[%c0, %c0_0, %c0_1] : memref<1x4x256xf32, #tpu.memory_space<vmem>>, vector<1x4x256xf32>
    %1 = vector.shape_cast %0 : vector<1x4x256xf32> to vector<4x256xf32>
    %c17_i32 = arith.constant 17 : i32
    %2 = tpu.dynamic_rotate %1 by %c17_i32 dim 1 : vector<4x256xf32>, i32 -> vector<4x256xf32>
    %c0_2 = arith.constant 0 : index
    %c0_3 = arith.constant 0 : index
    %3 = vector.load %arg2[%c0_2, %c0_3] : memref<9x256xf32, #tpu.memory_space<vmem>>, vector<1x256xf32>
    %4 = vector.broadcast %3 : vector<1x256xf32> to vector<4x256xf32>
    %5 = arith.addf %2, %4 : vector<4x256xf32>
    %c16_i32 = arith.constant 16 : i32
    %6 = tpu.dynamic_rotate %1 by %c16_i32 dim 1 : vector<4x256xf32>, i32 -> vector<4x256xf32>
    %c1 = arith.constant 1 : index
    %c0_4 = arith.constant 0 : index
    %7 = vector.load %arg2[%c1, %c0_4] : memref<9x256xf32, #tpu.memory_space<vmem>>, vector<1x256xf32>
    %8 = vector.broadcast %7 : vector<1x256xf32> to vector<4x256xf32>
    %9 = arith.addf %6, %8 : vector<4x256xf32>
    %c15_i32 = arith.constant 15 : i32
    %10 = tpu.dynamic_rotate %1 by %c15_i32 dim 1 : vector<4x256xf32>, i32 -> vector<4x256xf32>
    %c2 = arith.constant 2 : index
    %c0_5 = arith.constant 0 : index
    %11 = vector.load %arg2[%c2, %c0_5] : memref<9x256xf32, #tpu.memory_space<vmem>>, vector<1x256xf32>
    %12 = vector.broadcast %11 : vector<1x256xf32> to vector<4x256xf32>
    %13 = arith.addf %10, %12 : vector<4x256xf32>
    %14 = arith.maximumf %5, %13 : vector<4x256xf32>
    %c1_i32 = arith.constant 1 : i32
    %15 = tpu.dynamic_rotate %1 by %c1_i32 dim 1 : vector<4x256xf32>, i32 -> vector<4x256xf32>
    %c3 = arith.constant 3 : index
    %c0_6 = arith.constant 0 : index
    %16 = vector.load %arg2[%c3, %c0_6] : memref<9x256xf32, #tpu.memory_space<vmem>>, vector<1x256xf32>
    %17 = vector.broadcast %16 : vector<1x256xf32> to vector<4x256xf32>
    %18 = arith.addf %15, %17 : vector<4x256xf32>
    %19 = arith.maximumf %9, %18 : vector<4x256xf32>
    %c4 = arith.constant 4 : index
    %c0_7 = arith.constant 0 : index
    %20 = vector.load %arg2[%c4, %c0_7] : memref<9x256xf32, #tpu.memory_space<vmem>>, vector<1x256xf32>
    %21 = vector.broadcast %20 : vector<1x256xf32> to vector<4x256xf32>
    %22 = arith.addf %1, %21 : vector<4x256xf32>
    %c255_i32 = arith.constant 255 : i32
    %23 = tpu.dynamic_rotate %1 by %c255_i32 dim 1 : vector<4x256xf32>, i32 -> vector<4x256xf32>
    %c5 = arith.constant 5 : index
    %c0_8 = arith.constant 0 : index
    %24 = vector.load %arg2[%c5, %c0_8] : memref<9x256xf32, #tpu.memory_space<vmem>>, vector<1x256xf32>
    %25 = vector.broadcast %24 : vector<1x256xf32> to vector<4x256xf32>
    %26 = arith.addf %23, %25 : vector<4x256xf32>
    %27 = arith.maximumf %19, %26 : vector<4x256xf32>
    %c241_i32 = arith.constant 241 : i32
    %28 = tpu.dynamic_rotate %1 by %c241_i32 dim 1 : vector<4x256xf32>, i32 -> vector<4x256xf32>
    %c6 = arith.constant 6 : index
    %c0_9 = arith.constant 0 : index
    %29 = vector.load %arg2[%c6, %c0_9] : memref<9x256xf32, #tpu.memory_space<vmem>>, vector<1x256xf32>
    %30 = vector.broadcast %29 : vector<1x256xf32> to vector<4x256xf32>
    %31 = arith.addf %28, %30 : vector<4x256xf32>
    %32 = arith.maximumf %14, %31 : vector<4x256xf32>
    %c240_i32 = arith.constant 240 : i32
    %33 = tpu.dynamic_rotate %1 by %c240_i32 dim 1 : vector<4x256xf32>, i32 -> vector<4x256xf32>
    %c7 = arith.constant 7 : index
    %c0_10 = arith.constant 0 : index
    %34 = vector.load %arg2[%c7, %c0_10] : memref<9x256xf32, #tpu.memory_space<vmem>>, vector<1x256xf32>
    %35 = vector.broadcast %34 : vector<1x256xf32> to vector<4x256xf32>
    %36 = arith.addf %33, %35 : vector<4x256xf32>
    %37 = arith.maximumf %27, %36 : vector<4x256xf32>
    %c239_i32 = arith.constant 239 : i32
    %38 = tpu.dynamic_rotate %1 by %c239_i32 dim 1 : vector<4x256xf32>, i32 -> vector<4x256xf32>
    %c8 = arith.constant 8 : index
    %c0_11 = arith.constant 0 : index
    %39 = vector.load %arg2[%c8, %c0_11] : memref<9x256xf32, #tpu.memory_space<vmem>>, vector<1x256xf32>
    %40 = vector.broadcast %39 : vector<1x256xf32> to vector<4x256xf32>
    %41 = arith.addf %38, %40 : vector<4x256xf32>
    %42 = arith.maximumf %32, %41 : vector<4x256xf32>
    %c0_12 = arith.constant 0 : index
    %c0_13 = arith.constant 0 : index
    %c0_14 = arith.constant 0 : index
    %43 = vector.load %arg3[%c0_12, %c0_13, %c0_14] : memref<4x4x3xf32, #tpu.memory_space<vmem>>, vector<4x4x3xf32>
    %44 = vector.shape_cast %22 : vector<4x256xf32> to vector<1x4x256xf32>
    %45 = vector.extract_strided_slice %43 {offsets = [0, 0, 0], sizes = [4, 4, 1], strides = [1, 1, 1]} : vector<4x4x3xf32> to vector<4x4x1xf32>
    %46 = vector.broadcast %44 : vector<1x4x256xf32> to vector<4x4x256xf32>
    %47 = vector.broadcast %45 : vector<4x4x1xf32> to vector<4x4x256xf32>
    %48 = arith.addf %46, %47 : vector<4x4x256xf32>
    %49 = vector.shape_cast %37 : vector<4x256xf32> to vector<1x4x256xf32>
    %50 = vector.extract_strided_slice %43 {offsets = [0, 0, 1], sizes = [4, 4, 1], strides = [1, 1, 1]} : vector<4x4x3xf32> to vector<4x4x1xf32>
    %51 = vector.broadcast %49 : vector<1x4x256xf32> to vector<4x4x256xf32>
    %52 = vector.broadcast %50 : vector<4x4x1xf32> to vector<4x4x256xf32>
    %53 = arith.addf %51, %52 : vector<4x4x256xf32>
    %54 = arith.maximumf %48, %53 : vector<4x4x256xf32>
    %55 = vector.shape_cast %42 : vector<4x256xf32> to vector<1x4x256xf32>
    %56 = vector.extract_strided_slice %43 {offsets = [0, 0, 2], sizes = [4, 4, 1], strides = [1, 1, 1]} : vector<4x4x3xf32> to vector<4x4x1xf32>
    %57 = vector.broadcast %55 : vector<1x4x256xf32> to vector<4x4x256xf32>
    %58 = vector.broadcast %56 : vector<4x4x1xf32> to vector<4x4x256xf32>
    %59 = arith.addf %57, %58 : vector<4x4x256xf32>
    %60 = arith.maximumf %54, %59 : vector<4x4x256xf32>
    %cst = arith.constant dense<0.000000e+00> : vector<4x256xf32>
    %61 = vector.multi_reduction <add>, %60, %cst [1] : vector<4x4x256xf32> to vector<4x256xf32>
    %c0_15 = arith.constant 0 : index
    %c0_16 = arith.constant 0 : index
    %62 = vector.load %arg4[%c0_15, %c0_16] : memref<4x1xf32, #tpu.memory_space<vmem>>, vector<4x1xf32>
    %63 = vector.broadcast %62 : vector<4x1xf32> to vector<4x256xf32>
    %64 = arith.addf %61, %63 : vector<4x256xf32>
    %c0_17 = arith.constant 0 : index
    %c0_18 = arith.constant 0 : index
    %c0_19 = arith.constant 0 : index
    %65 = vector.load %arg5[%c0_17, %c0_18, %c0_19] : memref<1x4x256xf32, #tpu.memory_space<vmem>>, vector<1x4x256xf32>
    %66 = vector.shape_cast %65 : vector<1x4x256xf32> to vector<4x256xf32>
    %67 = vector.shape_cast %64 : vector<4x256xf32> to vector<1x4x256xf32>
    tpu.vector_store %arg5[%c0_17, %c0_18, %c0_19], %67 {strides = array<i32>} : memref<1x4x256xf32, #tpu.memory_space<vmem>>, vector<1x4x256xf32>,
    return
  }
  func.func @transform_0(%arg0: i32) -> (i32, i32, i32) {
    %c0_i32 = arith.constant 0 : i32
    %c0_i32_0 = arith.constant 0 : i32
    %c0_i32_1 = arith.constant 0 : i32
    return %arg0, %c0_i32, %c0_i32_0 : i32, i32, i32
  }
  func.func @transform_1(%arg0: i32) -> (i32, i32) {
    %c0_i32 = arith.constant 0 : i32
    %c0_i32_0 = arith.constant 0 : i32
    %c0_i32_1 = arith.constant 0 : i32
    return %c0_i32, %c0_i32_0 : i32, i32
  }
  func.func @transform_2(%arg0: i32) -> (i32, i32, i32) {
    %c0_i32 = arith.constant 0 : i32
    %c0_i32_0 = arith.constant 0 : i32
    %c0_i32_1 = arith.constant 0 : i32
    %c0_i32_2 = arith.constant 0 : i32
    return %c0_i32, %c0_i32_0, %c0_i32_1 : i32, i32, i32
  }
  func.func @transform_3(%arg0: i32) -> (i32, i32) {
    %c0_i32 = arith.constant 0 : i32
    %c0_i32_0 = arith.constant 0 : i32
    %c0_i32_1 = arith.constant 0 : i32
    return %c0_i32, %c0_i32_0 : i32, i32
  }
  func.func @transform_4(%arg0: i32) -> (i32, i32, i32) {
    %c0_i32 = arith.constant 0 : i32
    %c0_i32_0 = arith.constant 0 : i32
    %c0_i32_1 = arith.constant 0 : i32
    return %arg0, %c0_i32, %c0_i32_0 : i32, i32, i32
  }
}

</mosaic_0001>

<bundles_post_ra>
// kernel: tpu_custom_call.1
= control target key start
LH: loop header
LB: loop body
LE: loop exit
PB: predicated region body
PF: predicated region fallthrough
CT: control target
= control target key end

     0   :  { %9 = vsyncpa [#allocation3], 0  ;;  %s1329_s0 = inlined_call_operand.hbm [shape: f32[2,4,256], index: 0, kind: input, shape index: {}]   ;;  %s1330_s1 = inlined_call_operand.vmem [shape: f32[9,256], index: 1, kind: input, shape index: {}]   ;;  %s1331_s2 = inlined_call_operand.vmem [shape: f32[4,4,3], index: 2, kind: input, shape index: {}]   ;;  %s1332_s3 = inlined_call_operand.vmem [shape: f32[4,1], index: 3, kind: input, shape index: {}]   ;;  %s1333_s4 = inlined_call_operand.hbm [shape: f32[2,4,256], index: 4, kind: output, shape index: {}]  }
   0x1   :  { %11 = vsyncpa [#allocation3 + $0x1], 0 }
   0x2   :  { %12 = vsyncpa [#allocation4], 0 }
   0x3   :  { %14 = vsyncpa [#allocation4 + $0x1], 0  ;;  %s999_s15 = smov 0   ;;  %s1001_s16 = smov 0  }
   0x4   :  { %s1003_s17 = smov 0   ;;  %s1005_s18 = smov 0  }
   0x5 LB: > { %s1020_s19 = sadd.s32 4294967295, %s958_s18   ;;  %s768_s20 = sadd.s32 4294967294, %s958_s18   ;;  %s958_s18 = sphi %s1005_s18, %s1348_s18   ;;  %s954_s17 = sphi %s1003_s17, %s1347_s17   ;;  %s950_s16 = sphi %s1001_s16, %s1346_s16   ;;  %s946_s15 = sphi %s999_s15, %s1345_s15  }
   0x6   : > { %s1024_s21 = sadd.s32 1, %s958_s18   ;;  %s27_s22 = sadd.s32 1, %s954_s17 }
   0x7   : > { %s24_s23 = ssub.s32 %s958_s18, %s1024_s21  ;;  %p34_p0 = scmp.ne.s32.totalorder %s954_s17, %s950_s16 }
   0x8   : > { %p25_p1 = scmp.eq.s32.totalorder %s24_s23, 0  ;;  %p35_p2 = scmp.eq.s32.totalorder %s958_s18, 0 }
   0x9   : > { %p40_p3 = scmp.ne.s32.totalorder %s950_s16, %s946_s15  ;;  %p41_p4 = scmp.eq.s32.totalorder %s1020_s19, 0 }
   0xa   : > { %s1036_s24 = scalar_select %p25_p1, %s954_s17, %s27_s22  }
   0xb   : > { %p1038_p5 = por %p35_p2, %p34_p0  ;;  %p1042_p6 = por %p41_p4, %p40_p3 }
   0xc   : > { %p127_p7 = scmp.eq.s32.totalorder %s1020_s19, 1  ;;  %p133_p8 = scmp.eq.s32.totalorder %s768_s20, 1 }
   0xd   : > { %p804_p10 = scmp.lt.s32.totalorder %s958_s18, 2  ;;  %s162_s29 = sand.u32 1, %s954_s17  }
   0xe   : > { %p1049_p11 = por %p127_p7, %p34_p0  ;;  %p1053_p12 = por %p133_p8, %p40_p3 }
   0xf   : > { %s790_s30 = sshll.u32 %s958_s18, 7  ;;  %s771_s5 = sshll.u32 %s162_s29, 3 }
  0x10   : > { %s1337_s27 = scalar_select %p1049_p11, 1, 0 }
  0x11   : > { %s1338_s28 = scalar_select %p1053_p12, 1, 0 }
  0x12   : > { %s1062_s8 = scalar_lea.hbm %s1329_s0, %s790_s30  ;;  %s166_s9 = scalar_lea.vmem [#allocation2], %s771_s5 }
  0x13   : > { %s174_s10 = sshll.u32 %s166_s9, 4  ;;  %p1066_p13 = pnand %p804_p10, %p1038_p5  ;;  %s1070_s10 = int_to_ptr.vmem [resolvable:$true] %s174_s10 }
  0x14   : > { %s163_s12 = scalar_lea.sflag [#allocation3], %s162_s29  ;;  %s862_s13 = scalar_lea.hbm %s1062_s8, 128 }
  0x15   : > { %p863_p2 = scmp.ne.s32.totalorder %s1062_s8, %s862_s13  ;;  %p864_p3 = pneg %p1066_p13 }
  0x16   : > { %s867_s22 = scalar_lea.hbm %s1329_s0, 256  ;;  %p868_p5 = scmp.lt.u32.totalorder %s1062_s8, %s1329_s0 }
  0x17   : > { %p865_p4 = pnand %p864_p3, %p863_p2  ;;  %p869_p8 = scmp.lt.u32.totalorder %s867_s22, %s862_s13 }
  0x18   : > { %p871_p9 = scmp.lt.u32.totalorder %s862_s13, %s1062_s8 }
  0x19   : > { %p866_p7 = pneg %p865_p4  ;;  %p870_p10 = por %p869_p8, %p868_p5 }
  0x1b   : > { %p872_p0 = por %p871_p9, %p870_p10 }
  0x1d   : > { %p873_p1 = pnand %p872_p0, %p866_p7 }
  0x1f   : > { %876 = shalt.err (!%p873_p1)
}
  0x20   : > { %s877_s29 = scalar_lea.vmem %s1070_s10, 128  ;;  %s960_s30 = smov [#allocation2]  }
  0x21   : > { %p878_p2 = scmp.ne.s32.totalorder %s1070_s10, %s877_s29  ;;  %s882_s5 = sshll.u32 %s960_s30, 4  ;;  %s883_s5 = int_to_ptr.vmem [resolvable:$false] %s882_s5 }
  0x22   : > { %s884_s6 = scalar_lea.vmem %s883_s5, 256  ;;  %p885_p11 = scmp.lt.s32.totalorder %s1070_s10, %s883_s5 }
  0x23   : > { %p880_p4 = pnand %p878_p2, %p864_p3  ;;  %p886_p5 = scmp.lt.s32.totalorder %s884_s6, %s877_s29 }
  0x25   : > { %p881_p12 = pneg %p880_p4  ;;  %p887_p8 = por %p886_p5, %p885_p11 }
  0x27   : > { %p888_p9 = pnand %p887_p8, %p881_p12 }
  0x29   : > { %891 = shalt.err (!%p888_p9)
}
  0x2a   : > { %799 = dma.hbm_to_vmem [thread:$0]  (!%p1066_p13), %s1062_s8, 128, %s1070_s10, %s163_s12  }
  0x2b   : > { %p1340_p0 = scmp.lt.s32.totalorder %s958_s18, 3  ;;  %p1341_p1 = scmp.ge.s32.totalorder %s958_s18, 1 }
  0x2d   : > { %p180_p3 = pnand %p1341_p1, %p1340_p0 }
  0x2e   : > { %s1104_s7 = sand.u32 (!%p180_p3), 1, %s950_s16  }
  0x2f   : > { %183 = sbr.rel (%p180_p3) target bundleno = 287 (0x11f), region = 36  ;;  %s775_s9 = sshll.u32 (!%p180_p3), %s1104_s7, 3 }
  0x30   : > { %s186_s13 = scalar_lea.sflag (!%p180_p3), [#allocation3], %s1104_s7  ;;  %s189_s11 = scalar_lea.vmem (!%p180_p3), [#allocation2], %s775_s9 }
  0x36   : > { %937 = dma.done.wait (%p1042_p6), %s186_s13, 128  }
  0x37   : > { %939 = vsyncadd (%p1042_p6), %s186_s13, 4294967168  ;;  %v961_v0 = vmov 1   ;;  %v962_v1 = vmov 0   ;;  %v1114_v2 = vld [vmem:[%s189_s11] sm:$0xff]  ;;  %s963_s8 = smov 1   ;;  %s964_s10 = smov 16   ;;  %v222_v20 = vlaneseq }
  0x38   : > { %851 = vset.pattern.permute.xlu1 %v961_v0  ;;  %850 = vset.pattern.permute.xlu0 %v962_v1  ;;  %v216_v3 = vcombine.high %v1114_v2, %v1114_v2  ;;  %s965_s12 = smov 17   ;;  %s966_s26 = smov 15   ;;  %v422_v4 = vld [vmem:[%s1331_s2 + $0x4] sm:$0xf]  ;;  %v421_v5 = vld [vmem:[%s1331_s2] sm:$0xf] }
  0x39   : > { %287 = vrot.lane.b32.xlu1 %v1114_v2, %s963_s8  ;;  %241 = vrot.lane.b32.xlu0 %v1114_v2, %s964_s10  ;;  %s967_s14 = smov 127   ;;  %s968_s23 = smov 113   ;;  %v423_v6 = vld [vmem:[%s1331_s2 + $0x8] sm:$0xf]  ;;  %v970_v7 = vmov 2   ;;  %v1153_v23 = vshrl.u32 %v222_v20, 7 }
  0x3a   : > { %s969_s25 = smov 112   ;;  %s971_s13 = smov 111   ;;  %v424_v8 = vld [vmem:[%s1331_s2 + $0xc] sm:$0xf]  ;;  %v634_v9 = vld [vmem:[%s1332_s3] sm:$0xf] }
  0x3b   : > { %v1155_v24 = vand.u32 127, %v222_v20  ;;  %v1162_v27 = vsub.s32 0, %v1153_v23  ;;  %v1165_v28 = vsub.s32 1, %v1153_v23  ;;  %v779_v29 = vld [vmem:[%s1330_s1 + $0x3] ss:$8 sm:$0x3] }
  0x3c   : > { %v777_v30 = vld [vmem:[%s1330_s1 + $0x1] ss:$8 sm:$0x3]  ;;  %v1178_v31 = vld [vmem:[%s1330_s1] ss:$8 sm:$0x3] }
  0x3d   : > { %218 = vrot.lane.b32.xlu0 %v1114_v2, %s965_s12  ;;  %289 = vrot.lane.b32.xlu1 %v216_v3, %s963_s8  ;;  %vm291_vm0 = vcmp.lt.s32.totalorder %v1155_v24, 1  ;;  %vm245_vm1 = vcmp.lt.s32.totalorder %v1155_v24, 16  ;;  %v781_v32 = vld [vmem:[%s1330_s1 + $0x5] ss:$8 sm:$0x3]  ;;  %v300_v35 = vrot.slane %v779_v29, %v1162_v27  ;;  %vm224_vm2 = vcmp.lt.s32.totalorder %v1155_v24, 17 }
  0x3e   : > { %v254_v36 = vrot.slane %v777_v30, %v1162_v27  ;;  %v258_v37 = vrot.slane %v777_v30, %v1165_v28  ;;  %vm267_vm3 = vcmp.lt.s32.totalorder %v1155_v24, 15  ;;  %v780_v38 = vld [vmem:[%s1330_s1 + $0x4] ss:$8 sm:$0x3]  ;;  %v304_v39 = vrot.slane %v779_v29, %v1165_v28  ;;  %s791_s22 = sshll.u32 %s1020_s19, 7  ;;  %s684_s19 = scalar_lea.sflag [#allocation4], %s1104_s7 }
  0x3f   : > { %vm329_vm4 = vcmp.lt.s32.totalorder %v1155_v24, 127  ;;  %v232_v42 = vrot.slane %v1178_v31, %v1162_v27  ;;  %v338_v43 = vrot.slane %v781_v32, %v1162_v27  ;;  %v342_v44 = vrot.slane %v781_v32, %v1165_v28  ;;  %v783_v45 = vld [vmem:[%s1330_s1 + $0x7] ss:$8 sm:$0x3]  ;;  %s1285_s5 = scalar_lea.hbm %s1333_s4, %s791_s22  ;;  %p1342_p11 = scmp.ne.s32.totalorder %s1337_s27, 0 }
  0x40   : > { %v317_v48 = vrot.slane %v780_v38, %v1162_v27  ;;  %vm377_vm5 = vcmp.lt.s32.totalorder %v1155_v24, 112  ;;  %v778_v53 = vld [vmem:[%s1330_s1 + $0x2] ss:$8 sm:$0x3]  ;;  %v321_v56 = vrot.slane %v780_v38, %v1165_v28  ;;  %v972_v57 = vmov 839922192  }
  0x41   : > { %220 = vrot.lane.b32.xlu1 %v216_v3, %s965_s12  ;;  %243 = vrot.lane.b32.xlu0 %v216_v3, %s964_s10  ;;  %v442_v58 = vunpack.c.l.s4 %v972_v57  ;;  %v386_v59 = vrot.slane %v783_v45, %v1162_v27  ;;  %v390_v60 = vrot.slane %v783_v45, %v1165_v28  ;;  %vm353_vm6 = vcmp.lt.s32.totalorder %v1155_v24, 113 }
  0x42   : > { %v322_v20 = vcombine.low %v317_v48, %v321_v56  ;;  %vm401_vm7 = vcmp.lt.s32.totalorder %v1155_v24, 111  ;;  %vm577_vm8 = vcmask 1043456   ;;  %vm667_vm9 = vcmask 1041409  }
  0x43   : > { %v443_v29 = vunpack.c.0.s8 %v442_v58  ;;  %vm669_vm10 = vcmask 1045509   ;;  %vm672_vm11 = vcmask 1042434   ;;  %vm674_vm12 = vcmask 1046534  }
  0x44   : > { %vm677_vm13 = vcmask 1043459   ;;  %vm679_vm14 = vcmask 1047559  }
  0x45   : > { %265 = vrot.lane.b32.xlu1 %v216_v3, %s966_s26  ;;  %263 = vrot.lane.b32.xlu0 %v1114_v2, %s966_s26 }
  0x49   : > { %327 = vrot.lane.b32.xlu1 %v216_v3, %s967_s14  ;;  %325 = vrot.lane.b32.xlu0 %v1114_v2, %s967_s14 }
  0x4d   : > { %482 = vperm.xlu1 %851, %v422_v4   ;;  %431 = vperm.xlu0 %850, %v422_v4  }
  0x51   : > { %349 = vrot.lane.b32.xlu1 %v1114_v2, %s968_s23  ;;  %351 = vrot.lane.b32.xlu0 %v216_v3, %s968_s23  ;;  %s213_s23 = scalar_lea.vmem [#allocation5], %s775_s9  ;;  %s973_s9 = smov [#allocation5]  }
  0x52   : > { %852 = vset.pattern.permute.xlu1 %v962_v1 }
  0x55   : > { %373 = vrot.lane.b32.xlu1 %v1114_v2, %s969_s25  ;;  %375 = vrot.lane.b32.xlu0 %v216_v3, %s969_s25  ;;  %s698_s25 = sshll.u32 %s213_s23, 4  ;;  %s1287_s25 = int_to_ptr.vmem [resolvable:$true] %s698_s25 }
  0x56   : > { %s892_s6 = scalar_lea.vmem %s1287_s25, 128 }
  0x57   : > { %p893_p6 = scmp.ne.s32.totalorder %s1287_s25, %s892_s6 }
  0x59   : > { %427 = vperm.xlu1 %852, %v421_v5   ;;  %435 = vperm.xlu0 %850, %v423_v6   ;;  %p894_p12 = pnand %p893_p6, %p1342_p11 }
  0x5b   : > { %p895_p13 = pneg %p894_p12 }
  0x5d   : > { %853 = vset.pattern.permute.xlu1 %v961_v0  ;;  %854 = vset.pattern.permute.xlu0 %v961_v0 }
  0x5e   : > { %478 = vperm.xlu1 %853, %v421_v5   ;;  %486 = vperm.xlu0 %854, %v423_v6  }
  0x62   : > { %855 = vset.pattern.permute.xlu1 %v970_v7  ;;  %399 = vrot.lane.b32.xlu0 %v216_v3, %s971_s13  ;;  %v276_v3 = vrot.slane %v778_v53, %v1162_v27 }
  0x63   : > { %526 = vperm.xlu1 %855, %v422_v4  }
  0x66   : > { %490 = vperm.xlu0 %854, %v424_v8  }
  0x67   : > { %397 = vrot.lane.b32.xlu1 %v1114_v2, %s971_s13  ;;  %s896_s13 = sshll.u32 %s973_s9, 4  ;;  %s897_s13 = int_to_ptr.vmem [resolvable:$false] %s896_s13 }
  0x68   : > { %856 = vset.pattern.permute.xlu1 %v962_v1  ;;  %s898_s11 = scalar_lea.vmem %s897_s13, 256  ;;  %p899_p7 = scmp.lt.s32.totalorder %s1287_s25, %s897_s13 }
  0x69   : > { %p900_p10 = scmp.lt.s32.totalorder %s898_s11, %s892_s6 }
  0x6a   : > { %858 = vset.pattern.permute.xlu0 %v970_v7 }
  0x6b   : > { %439 = vperm.xlu1 %856, %v424_v8   ;;  %530 = vperm.xlu0 %858, %v423_v6   ;;  %v782_v6 = vld [vmem:[%s1330_s1 + $0x6] ss:$8 sm:$0x3]  ;;  %p901_p2 = por %p900_p10, %p899_p7 }
  0x6c   : > { %v362_v30 = vrot.slane %v782_v6, %v1162_v27 }
  0x6d   : > { %p902_p4 = pnand %p901_p2, %p895_p13 }
  0x6f   : > { %857 = vset.pattern.permute.xlu1 %v970_v7  ;;  %860 = vset.pattern.permute.xlu0 %v962_v1 }
  0x70   : > { %522 = vperm.xlu1 %857, %v421_v5  }
  0x74   : > { %534 = vperm.xlu1 %857, %v424_v8  }
  0x78   : > { %859 = vset.pattern.permute.xlu1 %v962_v1  ;;  %v236_v1 = vrot.slane %v1178_v31, %v1165_v28  ;;  %v366_v31 = vrot.slane %v782_v6, %v1165_v28 }
  0x79   : > { %637 = vperm.xlu1 %859, %v634_v9   ;;  %v280_v9 = vrot.slane %v778_v53, %v1165_v28 }
  0xab   : > { %v288_v10 = vpop.permute.xlu1 %287  ;;  %v242_v11 = vpop.permute.xlu0 %241 }
  0xaf   : > { %v1141_v12 = vpop.permute.xlu0 %218  ;;  %v290_v13 = vpop.permute.xlu1 %289 }
  0xb0   : > { %v292_v46 = vsel %vm291_vm0, %v288_v10, %v290_v13  ;;  %v293_v47 = vsel %vm291_vm0, %v290_v13, %v288_v10 }
  0xb1   : > { %v307_v61 = vadd.f32 %v300_v35, %v293_v47  ;;  %v308_v62 = vadd.f32 %v304_v39, %v292_v46  ;;  %v784_v39 = vld [vmem:[%s1330_s1 + $0x10] ss:$8 sm:$0x3] }
  0xb2   : > { %v410_v47 = vrot.slane %v784_v39, %v1162_v27 }
  0xb3   : > { %v1143_v14 = vpop.permute.xlu1 %220  ;;  %v244_v15 = vpop.permute.xlu0 %243 }
  0xb4   : > { %v246_v40 = vsel %vm245_vm1, %v242_v11, %v244_v15  ;;  %v247_v41 = vsel %vm245_vm1, %v244_v15, %v242_v11  ;;  %v225_v32 = vsel %vm224_vm2, %v1141_v12, %v1143_v14 }
  0xb5   : > { %v261_v51 = vadd.f32 %v254_v36, %v247_v41  ;;  %v262_v52 = vadd.f32 %v258_v37, %v246_v40 }
  0xb7   : > { %v1145_v16 = vpop.permute.xlu1 %265  ;;  %v1147_v17 = vpop.permute.xlu0 %263  ;;  %v309_v7 = vmax.f32 %v261_v51, %v307_v61  ;;  %v310_v8 = vmax.f32 %v262_v52, %v308_v62  ;;  %v324_v51 = vadd.f32 %v322_v20, %v1114_v2 }
  0xb8   : > { %v268_v13 = vsel %vm267_vm3, %v1147_v17, %v1145_v16  ;;  %v269_v15 = vsel %vm267_vm3, %v1145_v16, %v1147_v17 }
  0xb9   : > { %v283_v17 = vadd.f32 %v276_v3, %v269_v15  ;;  %v284_v35 = vadd.f32 %v280_v9, %v268_v13 }
  0xbb   : > { %v328_v18 = vpop.permute.xlu1 %327  ;;  %v326_v19 = vpop.permute.xlu0 %325 }
  0xbc   : > { %v330_v54 = vsel %vm329_vm4, %v326_v19, %v328_v18  ;;  %v331_v55 = vsel %vm329_vm4, %v328_v18, %v326_v19 }
  0xbd   : > { %v345_v4 = vadd.f32 %v338_v43, %v330_v54  ;;  %v346_v5 = vadd.f32 %v342_v44, %v331_v55  ;;  %v240_v43 = vadd.f32 %v236_v1, %v225_v32  ;;  %v446_v44 = vsub.s32 %v443_v29, %v1153_v23 }
  0xbf   : > { %v348_v16 = vmax.f32 %v310_v8, %v346_v5  ;;  %v286_v48 = vmax.f32 %v240_v43, %v284_v35 }
  0xcc   : > { %v1149_v21 = vpop.permute.xlu1 %482  ;;  %v1151_v22 = vpop.permute.xlu0 %431 }
  0xcd   : > { %v454_v56 = vrot.slane %v1151_v22, %v446_v44 }
  0xd0   : > { %v1157_v25 = vpop.permute.xlu1 %349  ;;  %v1159_v26 = vpop.permute.xlu0 %351 }
  0xd1   : > { %v354_v36 = vsel %vm353_vm6, %v1157_v25, %v1159_v26  ;;  %v355_v37 = vsel %vm353_vm6, %v1159_v26, %v1157_v25  ;;  %v414_v25 = vrot.slane %v784_v39, %v1165_v28 }
  0xd2   : > { %v369_v45 = vadd.f32 %v362_v30, %v354_v36  ;;  %v370_v46 = vadd.f32 %v366_v31, %v355_v37 }
  0xd4   : > { %v374_v33 = vpop.permute.xlu1 %373  ;;  %v376_v34 = vpop.permute.xlu0 %375  ;;  %v372_v2 = vmax.f32 %v286_v48, %v370_v46 }
  0xd5   : > { %v378_v63 = vsel %vm377_vm5, %v374_v33, %v376_v34  ;;  %v379_v0 = vsel %vm377_vm5, %v376_v34, %v374_v33  ;;  %v226_v33 = vsel %vm224_vm2, %v1143_v14, %v1141_v12  ;;  %v347_v34 = vmax.f32 %v309_v7, %v345_v4 }
  0xd6   : > { %v393_v18 = vadd.f32 %v386_v59, %v378_v63  ;;  %v394_v19 = vadd.f32 %v390_v60, %v379_v0  ;;  %v239_v41 = vadd.f32 %v232_v42, %v226_v33  ;;  %v474_v4 = vadd.f32 %v454_v56, %v324_v51 }
  0xd8   : > { %v1206_v49 = vpop.permute.xlu1 %427  ;;  %v1208_v50 = vpop.permute.xlu0 %435  ;;  %v395_v12 = vmax.f32 %v347_v34, %v393_v18  ;;  %v396_v14 = vmax.f32 %v348_v16, %v394_v19  ;;  %v285_v26 = vmax.f32 %v239_v41, %v283_v17 }
  0xd9   : > { %v461_v57 = vrot.slane %v1208_v50, %v446_v44  ;;  %v447_v50 = vrot.slane %v1206_v49, %v446_v44 }
  0xda   : > { %v495_v52 = vadd.f32 %v1149_v21, %v395_v12  ;;  %v496_v53 = vadd.f32 %v1149_v21, %v396_v14  ;;  %v371_v58 = vmax.f32 %v285_v26, %v369_v45 }
  0xdb   : > { %v475_v5 = vadd.f32 %v461_v57, %v324_v51  ;;  %v473_v29 = vadd.f32 %v447_v50, %v324_v51 }
  0xdc   : > { %v510_v62 = vcombine.low %v495_v52, %v496_v53 }
  0xdd   : > { %v479_v10 = vpop.permute.xlu1 %478  ;;  %v487_v11 = vpop.permute.xlu0 %486 }
  0xde   : > { %v497_v42 = vadd.f32 %v487_v11, %v395_v12  ;;  %v498_v54 = vadd.f32 %v487_v11, %v396_v14  ;;  %v493_v61 = vadd.f32 %v479_v10, %v395_v12  ;;  %v494_v21 = vadd.f32 %v479_v10, %v396_v14 }
  0xdf   : > { %v518_v18 = vmax.f32 %v474_v4, %v510_v62 }
  0xe0   : > { %v511_v63 = vcombine.low %v497_v42, %v498_v54  ;;  %v509_v11 = vcombine.low %v493_v61, %v494_v21 }
  0xe1   : > { %v400_v38 = vpop.permute.xlu0 %399 }
  0xe2   : > { %v527_v40 = vpop.permute.xlu1 %526  ;;  %v519_v10 = vmax.f32 %v475_v5, %v511_v63  ;;  %v517_v16 = vmax.f32 %v473_v29, %v509_v11 }
  0xe5   : > { %v491_v55 = vpop.permute.xlu0 %490 }
  0xe6   : > { %v398_v23 = vpop.permute.xlu1 %397  ;;  %v499_v13 = vadd.f32 %v491_v55, %v395_v12  ;;  %v500_v15 = vadd.f32 %v491_v55, %v396_v14 }
  0xe7   : > { %v402_v27 = vsel %vm401_vm7, %v398_v23, %v400_v38  ;;  %v403_v28 = vsel %vm401_vm7, %v400_v38, %v398_v23 }
  0xe8   : > { %v417_v59 = vadd.f32 %v410_v47, %v402_v27  ;;  %v418_v60 = vadd.f32 %v414_v25, %v403_v28  ;;  %v512_v17 = vcombine.low %v499_v13, %v500_v15 }
  0xea   : > { %v419_v0 = vmax.f32 %v371_v58, %v417_v59  ;;  %v420_v1 = vmax.f32 %v372_v2, %v418_v60  ;;  %v440_v3 = vpop.permute.xlu1 %439  ;;  %v531_v22 = vpop.permute.xlu0 %530 }
  0xeb   : > { %v468_v6 = vrot.slane %v440_v3, %v446_v44 }
  0xec   : > { %v539_v7 = vadd.f32 %v527_v40, %v419_v0  ;;  %v540_v24 = vadd.f32 %v527_v40, %v420_v1  ;;  %v541_v8 = vadd.f32 %v531_v22, %v419_v0  ;;  %v542_v9 = vadd.f32 %v531_v22, %v420_v1 }
  0xed   : > { %v476_v30 = vadd.f32 %v468_v6, %v324_v51 }
  0xee   : > { %v554_v19 = vcombine.low %v539_v7, %v540_v24  ;;  %v555_v20 = vcombine.low %v541_v8, %v542_v9 }
  0xef   : > { %v523_v31 = vpop.permute.xlu1 %522  ;;  %v520_v39 = vmax.f32 %v476_v30, %v512_v17 }
  0xf0   : > { %v563_v32 = vmax.f32 %v519_v10, %v555_v20  ;;  %v537_v33 = vadd.f32 %v523_v31, %v419_v0  ;;  %v538_v49 = vadd.f32 %v523_v31, %v420_v1  ;;  %v562_v34 = vmax.f32 %v518_v18, %v554_v19 }
  0xf2   : > { %v571_v35 = vcombine.high %v563_v32, %v563_v32  ;;  %v606_v36 = vsel %vm577_vm8, %v563_v32, 0.0  ;;  %v553_v37 = vcombine.low %v537_v33, %v538_v49  ;;  %v570_v38 = vcombine.high %v562_v34, %v562_v34 }
  0xf3   : > { %v607_v12 = vrot.slane %v606_v36, 4  ;;  %v535_v14 = vpop.permute.xlu1 %534  ;;  %v592_v40 = vsel %vm577_vm8, %v562_v34, 0.0 }
  0xf4   : > { %v613_v41 = vsel %vm577_vm8, %v571_v35, 0.0  ;;  %v561_v43 = vmax.f32 %v517_v16, %v553_v37  ;;  %v543_v44 = vadd.f32 %v535_v14, %v419_v0  ;;  %v544_v45 = vadd.f32 %v535_v14, %v420_v1 }
  0xf5   : > { %v608_v46 = vadd.f32 %v607_v12, %v606_v36  ;;  %v614_v47 = vrot.slane %v613_v41, 4  ;;  %v593_v25 = vrot.slane %v592_v40, 4  ;;  %v599_v26 = vsel %vm577_vm8, %v570_v38, 0.0 }
  0xf6   : > { %v569_v48 = vcombine.high %v561_v43, %v561_v43  ;;  %v578_v51 = vsel %vm577_vm8, %v561_v43, 0.0  ;;  %v556_v52 = vcombine.low %v543_v44, %v544_v45  ;;  %v600_v53 = vrot.slane %v599_v26, 4 }
  0xf7   : > { %v609_v42 = vrot.slane %v608_v46, 2  ;;  %v615_v54 = vadd.f32 %v614_v47, %v613_v41  ;;  %v579_v55 = vrot.slane %v578_v51, 4  ;;  %v594_v23 = vadd.f32 %v593_v25, %v592_v40 }
  0xf8   : > { %v585_v56 = vsel %vm577_vm8, %v569_v48, 0.0  ;;  %v564_v57 = vmax.f32 %v520_v39, %v556_v52  ;;  %v601_v27 = vadd.f32 %v600_v53, %v599_v26  ;;  %v638_v50 = vpop.permute.xlu1 %637 }
  0xf9   : > { %v610_v28 = vadd.f32 %v609_v42, %v608_v46  ;;  %v616_v58 = vrot.slane %v615_v54, 2  ;;  %v580_v2 = vadd.f32 %v579_v55, %v578_v51  ;;  %v586_v59 = vrot.slane %v585_v56, 4 }
  0xfa   : > { %v572_v60 = vcombine.high %v564_v57, %v564_v57  ;;  %v620_v61 = vsel %vm577_vm8, %v564_v57, 0.0  ;;  %v595_v21 = vrot.slane %v594_v23, 2  ;;  %v602_v62 = vrot.slane %v601_v27, 2 }
  0xfb   : > { %v611_v63 = vrot.slane %v610_v28, 1  ;;  %v617_v0 = vadd.f32 %v616_v58, %v615_v54  ;;  %v581_v1 = vrot.slane %v580_v2, 2  ;;  %v587_v3 = vadd.f32 %v586_v59, %v585_v56 }
  0xfc   : > { %v621_v22 = vrot.slane %v620_v61, 4  ;;  %v627_v4 = vsel %vm577_vm8, %v572_v60, 0.0  ;;  %v596_v5 = vadd.f32 %v595_v21, %v594_v23  ;;  %v603_v6 = vadd.f32 %v602_v62, %v601_v27 }
  0xfd   : > { %v628_v7 = vrot.slane %v627_v4, 4  ;;  %v582_v24 = vadd.f32 %v581_v1, %v580_v2  ;;  %v588_v8 = vrot.slane %v587_v3, 2  ;;  %v612_v9 = vadd.f32 %v611_v63, %v610_v28 }
  0xfe   : > { %v622_v11 = vadd.f32 %v621_v22, %v620_v61  ;;  %v597_v13 = vrot.slane %v596_v5, 1  ;;  %v604_v15 = vrot.slane %v603_v6, 1  ;;  %v618_v18 = vrot.slane %v617_v0, 1 }
  0xff   : > { %v629_v10 = vadd.f32 %v628_v7, %v627_v4  ;;  %v583_v19 = vrot.slane %v582_v24, 1  ;;  %v589_v20 = vadd.f32 %v588_v8, %v587_v3  ;;  %v639_v29 = vrot.slane %v638_v50, 1 }
 0x100   : > { %v623_v30 = vrot.slane %v622_v11, 2  ;;  %v598_v31 = vadd.f32 %v597_v13, %v596_v5  ;;  %v605_v32 = vadd.f32 %v604_v15, %v603_v6  ;;  %v619_v33 = vadd.f32 %v618_v18, %v617_v0 }
 0x101   : > { %v630_v49 = vrot.slane %v629_v10, 2  ;;  %v584_v34 = vadd.f32 %v583_v19, %v582_v24  ;;  %v590_v16 = vrot.slane %v589_v20, 1  ;;  %v640_v17 = vrot.slane %v638_v50, 2 }
 0x102   : > { %v624_v35 = vadd.f32 %v623_v30, %v622_v11  ;;  %v648_v36 = vadd.f32 %v639_v29, %v598_v31  ;;  %v649_v37 = vadd.f32 %v639_v29, %v605_v32  ;;  %v641_v26 = vrot.slane %v638_v50, 3 }
 0x103   : > { %v591_v38 = vadd.f32 %v590_v16, %v589_v20  ;;  %v631_v39 = vadd.f32 %v630_v49, %v629_v10  ;;  %v650_v14 = vadd.f32 %v640_v17, %v612_v9  ;;  %v651_v40 = vadd.f32 %v640_v17, %v619_v33 }
 0x104   : > { %v625_v12 = vrot.slane %v624_v35, 1  ;;  %v663_v41 = vcombine.low %v648_v36, %v649_v37  ;;  %v646_v44 = vadd.f32 %v638_v50, %v584_v34 }
 0x105   : > { %v632_v43 = vrot.slane %v631_v39, 1  ;;  %v647_v45 = vadd.f32 %v638_v50, %v591_v38  ;;  %v664_v47 = vcombine.low %v650_v14, %v651_v40 }
 0x106   : > { %v626_v46 = vadd.f32 %v625_v12, %v624_v35  ;;  %v666_v51 = vrot.slane %v663_v41, 7 }
 0x107   : > { %v633_v25 = vadd.f32 %v632_v43, %v631_v39  ;;  %v662_v48 = vcombine.low %v646_v44, %v647_v45  ;;  %v671_v54 = vrot.slane %v664_v47, 6 }
 0x108   : > { %v652_v52 = vadd.f32 %v641_v26, %v626_v46 }
 0x109   : > { %v653_v53 = vadd.f32 %v641_v26, %v633_v25  ;;  %v668_v42 = vsel %vm667_vm9, %v666_v51, %v662_v48 }
 0x10a   : > { %v670_v55 = vsel %vm669_vm10, %v666_v51, %v668_v42 }
 0x10b   : > { %v665_v23 = vcombine.low %v652_v52, %v653_v53  ;;  %v673_v56 = vsel %vm672_vm11, %v671_v54, %v670_v55 }
 0x10c   : > { %v675_v27 = vsel %vm674_vm12, %v671_v54, %v673_v56 }
 0x10d   : > { %v676_v57 = vrot.slane %v665_v23, 5 }
 0x10f   : > { %v678_v28 = vsel %vm677_vm13, %v676_v57, %v675_v27 }
 0x110   : > { %v680_v58 = vsel %vm679_vm14, %v676_v57, %v678_v28 }
 0x111   : > { %682 = vst [vmem:[%s213_s23] sm:$0xff] %v680_v58 }
 0x112   : > { %905 = shalt.err (!%p902_p4)
}
 0x113   : > { %s906_s7 = scalar_lea.hbm %s1285_s5, 128  ;;  %s910_s12 = scalar_lea.hbm %s1333_s4, 256 }
 0x114   : > { %p907_p5 = scmp.ne.s32.totalorder %s1285_s5, %s906_s7  ;;  %p911_p0 = scmp.lt.u32.totalorder %s1285_s5, %s1333_s4 }
 0x115   : > { %p912_p1 = scmp.lt.u32.totalorder %s910_s12, %s906_s7  ;;  %p914_p6 = scmp.lt.u32.totalorder %s906_s7, %s1285_s5 }
 0x116   : > { %p908_p8 = pnand %p907_p5, %p1342_p11 }
 0x117   : > { %p913_p3 = por %p912_p1, %p911_p0 }
 0x118   : > { %p909_p9 = pneg %p908_p8 }
 0x119   : > { %p915_p12 = por %p914_p6, %p913_p3 }
 0x11b   : > { %p916_p13 = pnand %p915_p12, %p909_p9 }
 0x11d   : > { %919 = shalt.err (!%p916_p13)
}
 0x11e   : > { %794 = dma.vmem_to_hbm [thread:$0]  (%p1342_p11), %s1287_s25, 128, %s1285_s5, %s684_s19  }
 0x11f PF: > { %s710_s20 = sand.u32 1, %s946_s15   ;;  %p1343_p7 = scmp.ne.s32.totalorder %s1338_s28, 0 }
 0x120   : > { %p1344_p10 = scmp.ge.s32.totalorder %s958_s18, 2  ;;  %s711_s22 = scalar_lea.sflag [#allocation4], %s710_s20 }
 0x122   : > { %p801_p2 = pnand %p1344_p10, %p1343_p7 }
 0x124   : > { %941 = dma.done.wait (!%p801_p2), %s711_s22, 128  }
 0x125   : > { %943 = vsyncadd (!%p801_p2), %s711_s22, 4294967168  ;;  %p17_p4 = scmp.ge.s32.totalorder %s1024_s21, 4   ;;  %s1345_s15 = smov %s950_s16 }
 0x126   : > { %s1346_s16 = smov %s954_s17  ;;  %s1347_s17 = smov %s1036_s24 }
 0x127   : > { %s1348_s18 = smov %s1024_s21  ;;  %19 = sbr.rel (!%p17_p4) target bundleno = 5 (0x5), region = 89 }
 0x12e   :  { %716 = vsyncpa [#allocation3], 1 }
 0x12f   :  { %718 = vsyncpa [#allocation3 + $0x1], 1 }
 0x130   :  { %719 = vsyncpa [#allocation4], 1 }
 0x131   :  { %721 = vsyncpa [#allocation4 + $0x1], 1 }

</bundles_post_ra>
